<compile_context>
chip_gen: v7x
topology: tpu7x:2x2x1
jax: 0.10.0
libtpu: 0.0.40
codegen_flags: <defaults>
</compile_context>

<pallas_src>
import math
import functools

import jax
import jax.numpy as jnp
from jax import lax
from jax.experimental import pallas as pl
from jax.experimental.pallas import tpu as pltpu


_TM_CAP = 512                       # adj row-tile height target
_TK_CAP = 2048                      # adj K-tile width when N is large
_RESIDENT_RHS_LIMIT = 16 * 1024 * 1024  # VMEM bytes allowed for a resident x/support


def _round_up(v, m):
    return (v + m - 1) // m * m


def _masked_adj(adj_ref, *, num_k, tk, ragged_k, n_valid_last):
    """Current adj tile; zero the garbage columns of a ragged last-K tile."""
    blk = adj_ref[...]
    if not ragged_k:                 # static: no masking code emitted
        return blk
    k = pl.program_id(1)
    col = lax.broadcasted_iota(jnp.int32, blk.shape, 1)
    limit = jnp.where(k == num_k - 1, n_valid_last, tk)
    return jnp.where(col < limit, blk, jnp.zeros_like(blk))


def _rhs_kslice(rhs_ref, *, num_k, tk, resident):
    """Current K window of the (resident or streamed) x / support operand."""
    if (not resident) or num_k == 1:
        return rhs_ref[...]
    k = pl.program_id(1)
    # tk is a multiple of 128 whenever num_k > 1.
    return rhs_ref[pl.ds(pl.multiple_of(k * tk, 128), tk), :]


def _gcn_reassoc_kernel(adj_ref, x_ref, w_ref, b_ref, o_ref, acc_ref, *,
                        num_k, tk, ragged_k, n_valid_last, rhs_resident):
    """out = ((adj @ x) @ W) + b   (used when F_in < F_out)."""
    k = pl.program_id(1)

    @pl.when(k == 0)
    def _():
        acc_ref[...] = jnp.zeros_like(acc_ref)

    adj_blk = _masked_adj(adj_ref, num_k=num_k, tk=tk,
                          ragged_k=ragged_k, n_valid_last=n_valid_last)
    rhs = _rhs_kslice(x_ref, num_k=num_k, tk=tk, resident=rhs_resident)
    acc_ref[...] += jnp.dot(adj_blk, rhs, preferred_element_type=jnp.float32)

    @pl.when(k == num_k - 1)
    def _():
        # Keep the (adj @ x) partial in f32; W is passed in f32 (small).
        out = jnp.dot(acc_ref[...], w_ref[...],
                      preferred_element_type=jnp.float32)
        o_ref[...] = (out + b_ref[...]).astype(o_ref.dtype)


def _gcn_support_f32_kernel(adj_ref, s_ref, b_ref, o_ref, *,
                            num_k, tk, ragged_k, n_valid_last, rhs_resident):
    """out = (adj @ support) + b, accumulating directly into the f32 output."""
    k = pl.program_id(1)

    adj_blk = _masked_adj(adj_ref, num_k=num_k, tk=tk,
                          ragged_k=ragged_k, n_valid_last=n_valid_last)
    rhs = _rhs_kslice(s_ref, num_k=num_k, tk=tk, resident=rhs_resident)
    part = jnp.dot(adj_blk, rhs, preferred_element_type=jnp.float32)

    @pl.when(k == 0)
    def _():
        o_ref[...] = part

    @pl.when(k != 0)
    def _():
        o_ref[...] += part

    @pl.when(k == num_k - 1)
    def _():
        o_ref[...] = o_ref[...] + b_ref[...]


def _gcn_support_kernel(adj_ref, s_ref, b_ref, o_ref, acc_ref, *,
                        num_k, tk, ragged_k, n_valid_last, rhs_resident):
    """out = (adj @ support) + b with an f32 scratch (non-f32 output dtype)."""
    k = pl.program_id(1)

    @pl.when(k == 0)
    def _():
        acc_ref[...] = jnp.zeros_like(acc_ref)

    adj_blk = _masked_adj(adj_ref, num_k=num_k, tk=tk,
                          ragged_k=ragged_k, n_valid_last=n_valid_last)
    rhs = _rhs_kslice(s_ref, num_k=num_k, tk=tk, resident=rhs_resident)
    acc_ref[...] += jnp.dot(adj_blk, rhs, preferred_element_type=jnp.float32)

    @pl.when(k == num_k - 1)
    def _():
        o_ref[...] = (acc_ref[...] + b_ref[...]).astype(o_ref.dtype)


@functools.partial(jax.jit, static_argnames=("compute_dtype",))
def graph_convolution(x, adj, weight, bias=None, *, compute_dtype=None):
    """Pallas implementation of GraphConvolution.forward.

    x:      (N, F_in)     float32
    adj:    (N, N)        float / bf16 (streamed as-is; never copied/padded)
    weight: (F_in, F_out) float32
    bias:   (1, 1, F_out) float32 or None
    compute_dtype: optional MXU/stream dtype (e.g. jnp.bfloat16).  For the
        full bandwidth win, store adj in that dtype upstream so no wrapper
        cast (an extra HBM pass over N^2) is needed.  Accumulation stays f32.
    returns (N, F_out)    x.dtype
    """
    n, f_in = x.shape
    f_out = weight.shape[1]
    out_dtype = x.dtype
    out_itemsize = jnp.dtype(out_dtype).itemsize

    cdt = jnp.dtype(compute_dtype) if compute_dtype is not None else jnp.dtype(adj.dtype)
    itemsize = cdt.itemsize
    adj_c = adj if adj.dtype == cdt else adj.astype(cdt)   # no-op in the default case

    # Lane-dense feature dims (multiples of 128) -> unmasked stores, full MXU
    # width.  Only the small (N,F)/(F,F) operands are padded, never adj.
    f_in_pad = _round_up(f_in, 128)
    f_out_pad = _round_up(f_out, 128)

    # Row tile: large for pipeline-overhead amortization, capped at ~N/2 so
    # v7x's two TensorCores both get work on the "parallel" axis.
    half = -(-n // 2)
    tm = min(_TM_CAP, _round_up(half, 8))
    if tm >= n:
        tm = n                      # block dim == full array dim is always legal
    num_rows = -(-n // tm)
    rows_pad = num_rows * tm        # output allocated to row-tile multiple (cheap)

    # K tile over adj columns.  N <= 2048: one full-width tile (no masking).
    # Larger N: 2048-wide tiles; ragged last tile is masked in-kernel so adj
    # itself is never padded in HBM.
    if n <= _TK_CAP:
        tk, num_k = n, 1
    else:
        tk = _TK_CAP
        num_k = -(-n // tk)
    k_rows_pad = num_k * tk
    ragged_k = (num_k > 1) and (n % tk != 0)
    n_valid_last = n - (num_k - 1) * tk
    grid = (num_rows, num_k)

    # Bias (zeros when absent), f32, lane-padded.
    if bias is not None:
        b_p = jnp.pad(bias.reshape(1, f_out).astype(jnp.float32),
                      ((0, 0), (0, f_out_pad - f_out)))
    else:
        b_p = jnp.zeros((1, f_out_pad), jnp.float32)

    # Contraction order: contract adj against the narrower of x / support so
    # the dominant 2*N^2*width term uses min(F_in, F_out).
    reassociate = f_in < f_out

    if reassociate:
        rhs = jnp.pad(x.astype(cdt),
                      ((0, k_rows_pad - n), (0, f_in_pad - f_in)))
        w_p = jnp.pad(weight.astype(jnp.float32),
                      ((0, f_in_pad - f_in), (0, f_out_pad - f_out)))
        rhs_cols = f_in_pad
    else:
        support = jnp.dot(x, weight,
                          preferred_element_type=jnp.float32).astype(cdt)
        rhs = jnp.pad(support, ((0, k_rows_pad - n), (0, f_out_pad - f_out)))
        rhs_cols = f_out_pad

    # Resident x/support: constant block index -> fetched from HBM exactly
    # once; K window sliced in-kernel.  Streamed fallback for very large N*F.
    rhs_bytes = k_rows_pad * rhs_cols * itemsize
    rhs_resident = (num_k == 1) or (rhs_bytes <= _RESIDENT_RHS_LIMIT)
    rhs_block_rows = k_rows_pad if rhs_resident else tk
    rhs_index_map = (lambda i, k: (0, 0)) if rhs_resident else (lambda i, k: (k, 0))

    adj_spec = pl.BlockSpec((tm, tk), lambda i, k: (i, k))
    rhs_spec = pl.BlockSpec((rhs_block_rows, rhs_cols), rhs_index_map)
    b_spec = pl.BlockSpec((1, f_out_pad), lambda i, k: (0, 0))
    out_specs = pl.BlockSpec((tm, f_out_pad), lambda i, k: (i, 0))
    out_shape = jax.ShapeDtypeStruct((rows_pad, f_out_pad), out_dtype)

    static = dict(num_k=num_k, tk=tk, ragged_k=ragged_k,
                  n_valid_last=n_valid_last, rhs_resident=rhs_resident)

    if reassociate:
        kernel = functools.partial(_gcn_reassoc_kernel, **static)
        operands = (adj_c, rhs, w_p, b_p)
        in_specs = [adj_spec, rhs_spec,
                    pl.BlockSpec((f_in_pad, f_out_pad), lambda i, k: (0, 0)),
                    b_spec]
        scratch_shapes = [pltpu.VMEM((tm, f_in_pad), jnp.float32)]
        acc_bytes = tm * f_in_pad * 4
        w_bytes = 2 * f_in_pad * f_out_pad * 4
    elif out_dtype == jnp.float32:
        kernel = functools.partial(_gcn_support_f32_kernel, **static)
        operands = (adj_c, rhs, b_p)
        in_specs = [adj_spec, rhs_spec, b_spec]
        scratch_shapes = []
        acc_bytes = 0
        w_bytes = 0
    else:
        kernel = functools.partial(_gcn_support_kernel, **static)
        operands = (adj_c, rhs, b_p)
        in_specs = [adj_spec, rhs_spec, b_spec]
        scratch_shapes = [pltpu.VMEM((tm, f_out_pad), jnp.float32)]
        acc_bytes = tm * f_out_pad * 4
        w_bytes = 0

    # VMEM budget from the actual working set (double buffers counted), with
    # 2x headroom, capped below v7x's 64 MiB physical ceiling.
    needed = (2 * tm * tk * itemsize
              + 2 * rhs_block_rows * rhs_cols * itemsize
              + 2 * tm * f_out_pad * out_itemsize
              + acc_bytes + w_bytes + 2 * f_out_pad * 4)
    vmem_limit = int(min(max(2 * needed, 32 << 20), 56 << 20))

    flops = 2 * n * n * min(f_in, f_out) + 2 * n * f_in * f_out
    rhs_hbm = rhs_bytes if rhs_resident else rhs_bytes * num_rows
    bytes_accessed = (n * n * itemsize + rhs_hbm
                      + f_in_pad * f_out_pad * 4
                      + rows_pad * f_out_pad * out_itemsize)

    out = pl.pallas_call(
        kernel,
        out_shape=out_shape,
        grid_spec=pltpu.PrefetchScalarGridSpec(
            num_scalar_prefetch=0,
            grid=grid,
            in_specs=in_specs,
            out_specs=out_specs,
            scratch_shapes=scratch_shapes,
        ),
        compiler_params=pltpu.CompilerParams(
            dimension_semantics=("parallel", "arbitrary"),
            vmem_limit_bytes=vmem_limit,
        ),
        cost_estimate=pl.CostEstimate(
            flops=int(flops), transcendentals=0,
            bytes_accessed=int(bytes_accessed)),
    )(*operands)

    return out[:n, :f_out]


if __name__ == "__main__":
    key = jax.random.PRNGKey(0)
    (k_x, k_adj, k_w, k_b, k_x2, k_adj2, k_w2,
     k_x3, k_adj3, k_w3) = jax.random.split(key, 10)

    # ---- Config A: F_in < F_out (reassociated adj@x path); module default bias=False.
    n_nodes, in_features, out_features = 8, 16, 32
    stdv = 1.0 / math.sqrt(out_features)
    weight = jax.random.uniform(k_w, (in_features, out_features), jnp.float32,
                                minval=-stdv, maxval=stdv)
    bias = jax.random.uniform(k_b, (1, 1, out_features), jnp.float32,
                              minval=-stdv, maxval=stdv)
    x = jax.random.normal(k_x, (n_nodes, in_features), jnp.float32)
    adj = jax.random.uniform(k_adj, (n_nodes, n_nodes), jnp.float32)

    ref = adj @ (x @ weight)

    out = jax.block_until_ready(graph_convolution(x, adj, weight))
    assert out.shape == (n_nodes, out_features)
    assert jnp.allclose(out, ref, atol=1e-5, rtol=1e-5)

    out_b = jax.block_until_ready(graph_convolution(x, adj, weight, bias))
    assert jnp.allclose(out_b, ref + bias.reshape(1, out_features),
                        atol=1e-5, rtol=1e-5)

    # ---- Config B: F_in > F_out (precomputed-support path), non-multiple-of-8 N,
    #      f32 output accumulated directly into the resident output block.
    n2, fi2, fo2 = 24, 32, 16
    stdv2 = 1.0 / math.sqrt(fo2)
    w2 = jax.random.uniform(k_w2, (fi2, fo2), jnp.float32, minval=-stdv2, maxval=stdv2)
    x2 = jax.random.normal(k_x2, (n2, fi2), jnp.float32)
    adj2 = jax.random.uniform(k_adj2, (n2, n2), jnp.float32)
    ref2 = adj2 @ (x2 @ w2)
    out2 = jax.block_until_ready(graph_convolution(x2, adj2, w2))
    assert out2.shape == (n2, fo2)
    assert jnp.allclose(out2, ref2, atol=1e-5, rtol=1e-5)

    # ---- Optional bf16 adj stream (halves adj HBM bytes; f32 accumulation kept).
    out_bf16 = jax.block_until_ready(
        graph_convolution(x, adj, weight, compute_dtype=jnp.bfloat16))
    assert jnp.allclose(out_bf16, ref, atol=5e-2, rtol=5e-2)

    # ---- Config C: N > 2048 exercises multi-K-tile streaming, the unpadded adj
    #      with in-kernel masking of the ragged last K tile, ragged row tiles,
    #      and the resident-rhs pl.ds K-window slicing.
    n3, fi3, fo3 = 2200, 32, 48
    stdv3 = 1.0 / math.sqrt(fo3)
    w3 = jax.random.uniform(k_w3, (fi3, fo3), jnp.float32, minval=-stdv3, maxval=stdv3)
    x3 = jax.random.normal(k_x3, (n3, fi3), jnp.float32)
    adj3 = jax.random.uniform(k_adj3, (n3, n3), jnp.float32)
    ref3 = (adj3 @ x3) @ w3          # same association as the kernel's reassoc path
    out3 = jax.block_until_ready(graph_convolution(x3, adj3, w3))
    assert out3.shape == (n3, fo3)
    assert bool(jnp.all(jnp.isfinite(out3)))
    assert jnp.allclose(out3, ref3, atol=2e-2, rtol=2e-3)

    print("KERNEL_OK")
</pallas_src>

<mosaic_0001>
module attributes {stable_mosaic.version = 11 : i64} {
  func.func @_gcn_reassoc_kernel(%arg0: i32, %arg1: i32, %arg2: memref<8x8xf32, #tpu.memory_space<vmem>>, %arg3: memref<8x128xf32, #tpu.memory_space<vmem>>, %arg4: memref<128x128xf32, #tpu.memory_space<vmem>>, %arg5: memref<1x128xf32, #tpu.memory_space<vmem>>, %arg6: memref<8x128xf32, #tpu.memory_space<vmem>>, %arg7: memref<8x128xf32, #tpu.memory_space<vmem>>) attributes {dimension_semantics = [#tpu.dimension_semantics<parallel>, #tpu.dimension_semantics<arbitrary>], iteration_bounds = array<i64: 1, 1>, scalar_prefetch = 0 : i64, scratch_operands = 1 : i64, tpu.core_type = #tpu.core_type<tc>, window_params = [{transform_indices = @transform_0, window_bounds = array<i64: 8, 8>}, {pipeline_mode = #tpu.pipeline_mode<synchronous>, transform_indices = @transform_1, window_bounds = array<i64: 8, 128>}, {pipeline_mode = #tpu.pipeline_mode<synchronous>, transform_indices = @transform_2, window_bounds = array<i64: 128, 128>}, {pipeline_mode = #tpu.pipeline_mode<synchronous>, transform_indices = @transform_3, window_bounds = array<i64: 1, 128>}, {transform_indices = @transform_4, window_bounds = array<i64: 8, 128>}]} {
    %c0_i32 = arith.constant 0 : i32
    %0 = arith.cmpi eq, %arg1, %c0_i32 : i32
    %1 = arith.extui %0 : i1 to i32
    %c0_i32_0 = arith.constant 0 : i32
    %2 = arith.cmpi ne, %1, %c0_i32_0 : i32
    scf.if %2 {
      %cst_10 = arith.constant 0.000000e+00 : f32
      %12 = vector.broadcast %cst_10 : f32 to vector<8x128xf32>
      %c0_11 = arith.constant 0 : index
      %c0_12 = arith.constant 0 : index
      %13 = vector.load %arg7[%c0_11, %c0_12] : memref<8x128xf32, #tpu.memory_space<vmem>>, vector<8x128xf32>
      tpu.vector_store %arg7[%c0_11, %c0_12], %12 {strides = array<i32>} : memref<8x128xf32, #tpu.memory_space<vmem>>, vector<8x128xf32>,
    } else {
    }
    %c0 = arith.constant 0 : index
    %c0_1 = arith.constant 0 : index
    %3 = vector.load %arg2[%c0, %c0_1] : memref<8x8xf32, #tpu.memory_space<vmem>>, vector<8x8xf32>
    %c0_2 = arith.constant 0 : index
    %c0_3 = arith.constant 0 : index
    %4 = vector.load %arg3[%c0_2, %c0_3] : memref<8x128xf32, #tpu.memory_space<vmem>>, vector<8x128xf32>
    %c0_4 = arith.constant 0 : index
    %c0_5 = arith.constant 0 : index
    %5 = vector.load %arg7[%c0_4, %c0_5] : memref<8x128xf32, #tpu.memory_space<vmem>>, vector<8x128xf32>
    %cst = arith.constant dense<0.000000e+00> : vector<8x128xf32>
    %6 = tpu.matmul %3, %4, %cst {dimension_numbers = #tpu.dot_dimension_numbers<[1], [0], [0], [1], [0, 0, 1, 1], [], []>} : vector<8x8xf32>, vector<8x128xf32>, vector<8x128xf32> -> vector<8x128xf32>
    %7 = arith.addf %5, %6 : vector<8x128xf32>
    %c0_6 = arith.constant 0 : index
    %c0_7 = arith.constant 0 : index
    %8 = vector.load %arg7[%c0_6, %c0_7] : memref<8x128xf32, #tpu.memory_space<vmem>>, vector<8x128xf32>
    tpu.vector_store %arg7[%c0_6, %c0_7], %7 {strides = array<i32>} : memref<8x128xf32, #tpu.memory_space<vmem>>, vector<8x128xf32>,
    %c0_i32_8 = arith.constant 0 : i32
    %9 = arith.cmpi eq, %arg1, %c0_i32_8 : i32
    %10 = arith.extui %9 : i1 to i32
    %c0_i32_9 = arith.constant 0 : i32
    %11 = arith.cmpi ne, %10, %c0_i32_9 : i32
    scf.if %11 {
      %c0_10 = arith.constant 0 : index
      %c0_11 = arith.constant 0 : index
      %12 = vector.load %arg7[%c0_10, %c0_11] : memref<8x128xf32, #tpu.memory_space<vmem>>, vector<8x128xf32>
      %c0_12 = arith.constant 0 : index
      %c0_13 = arith.constant 0 : index
      %13 = vector.load %arg4[%c0_12, %c0_13] : memref<128x128xf32, #tpu.memory_space<vmem>>, vector<128x128xf32>
      %cst_14 = arith.constant dense<0.000000e+00> : vector<8x128xf32>
      %14 = tpu.matmul %12, %13, %cst_14 {dimension_numbers = #tpu.dot_dimension_numbers<[1], [0], [0], [1], [0, 0, 1, 1], [], []>} : vector<8x128xf32>, vector<128x128xf32>, vector<8x128xf32> -> vector<8x128xf32>
      %c0_15 = arith.constant 0 : index
      %c0_16 = arith.constant 0 : index
      %15 = vector.load %arg5[%c0_15, %c0_16] : memref<1x128xf32, #tpu.memory_space<vmem>>, vector<1x128xf32>
      %16 = vector.broadcast %15 : vector<1x128xf32> to vector<8x128xf32>
      %17 = arith.addf %14, %16 : vector<8x128xf32>
      %c0_17 = arith.constant 0 : index
      %c0_18 = arith.constant 0 : index
      %18 = vector.load %arg6[%c0_17, %c0_18] : memref<8x128xf32, #tpu.memory_space<vmem>>, vector<8x128xf32>
      tpu.vector_store %arg6[%c0_17, %c0_18], %17 {strides = array<i32>} : memref<8x128xf32, #tpu.memory_space<vmem>>, vector<8x128xf32>,
    } else {
    }
    return
  }
  func.func @transform_0(%arg0: i32, %arg1: i32) -> (i32, i32) {
    %c0_i32 = arith.constant 0 : i32
    return %arg0, %arg1 : i32, i32
  }
  func.func @transform_1(%arg0: i32, %arg1: i32) -> (i32, i32) {
    %c0_i32 = arith.constant 0 : i32
    %c0_i32_0 = arith.constant 0 : i32
    %c0_i32_1 = arith.constant 0 : i32
    return %c0_i32, %c0_i32_0 : i32, i32
  }
  func.func @transform_2(%arg0: i32, %arg1: i32) -> (i32, i32) {
    %c0_i32 = arith.constant 0 : i32
    %c0_i32_0 = arith.constant 0 : i32
    %c0_i32_1 = arith.constant 0 : i32
    return %c0_i32, %c0_i32_0 : i32, i32
  }
  func.func @transform_3(%arg0: i32, %arg1: i32) -> (i32, i32) {
    %c0_i32 = arith.constant 0 : i32
    %c0_i32_0 = arith.constant 0 : i32
    %c0_i32_1 = arith.constant 0 : i32
    return %c0_i32, %c0_i32_0 : i32, i32
  }
  func.func @transform_4(%arg0: i32, %arg1: i32) -> (i32, i32) {
    %c0_i32 = arith.constant 0 : i32
    %c0_i32_0 = arith.constant 0 : i32
    return %arg0, %c0_i32 : i32, i32
  }
}

</mosaic_0001>

<bundles_post_ra>
// kernel: graph_convolution.1
= control target key start
LH: loop header
LB: loop body
LE: loop exit
PB: predicated region body
PF: predicated region fallthrough
CT: control target
= control target key end

     0   :  { %vm26_vm0 = vcmask 64512   ;;  %v327_v2 = vmov 0.0   ;;  %vm328_vm1 = vmmov 0   ;;  %v329_v6 = vmov 0.0|0.0   ;;  %s425_s0 = inlined_call_operand.vmem [shape: f32[8,8], index: 0, kind: input, shape index: {}]   ;;  %s426_s1 = inlined_call_operand.vmem [shape: f32[8,128], index: 1, kind: input, shape index: {}]   ;;  %s427_s2 = inlined_call_operand.vmem [shape: f32[128,128], index: 2, kind: input, shape index: {}]   ;;  %s428_s3 = inlined_call_operand.vmem [shape: f32[1,128], index: 3, kind: input, shape index: {}]   ;;  %s429_s4 = inlined_call_operand.hbm [shape: f32[8,128], index: 4, kind: output, shape index: {}]  }
   0x1   :  { %v24_v0 = vld [vmem:[%s426_s1] sm:$0xff]  ;;  %235 = vmatprep.subr.mxu0 %v327_v2  ;;  %237 = vmatprep.mubr.msk.f32.mxu0 %vm328_vm1, %v327_v2  ;;  %v107_v4 = vld [vmem:[%s427_s2 + $0x8] sm:$0xff]  ;;  %v108_v5 = vld [vmem:[%s427_s2 + $0x10] sm:$0xff] }
   0x2   :  { %v23_v1 = vld [vmem:[%s425_s0] sm:$0xff]  ;;  %236 = vmatpush3.msra.mxu0 %v24_v0  ;;  %275 = vmatprep.subr.bf16.mxu1 %v329_v6  ;;  %v109_v8 = vld [vmem:[%s427_s2 + $0x18] sm:$0xff]  ;;  %v111_v11 = vld [vmem:[%s427_s2 + $0x28] sm:$0xff] }
   0x3   :  { %v106_v3 = vld [vmem:[%s427_s2] sm:$0xff]  ;;  %238 = vmatmul.mubr.msk.f32.vlgmr.msra.gmra.mrb[0].mxu0 %vm26_vm0, %v23_v1  ;;  %272 = vmatprep.mubr.msk.f32.mxu1 %vm328_vm1, %v327_v2  ;;  %v279_v9 = vpack.c.bf16 %v109_v8, %v108_v5 }
   0x4   :  { %v276_v7 = vpack.c.bf16 %v107_v4, %v106_v3  ;;  %v110_v10 = vld [vmem:[%s427_s2 + $0x20] sm:$0xff] }
   0x6   :  { %277 = vmatpush3.bf16.msra.mxu1 %v276_v7 }
   0x7   :  { %278 = vmatprep.subr.bf16.mxu1 %v329_v6 }
   0x8   :  { %9 = vsyncpa [#allocation4], 0  ;;  %v282_v12 = vpack.c.bf16 %v111_v11, %v110_v10  ;;  %v112_v13 = vld [vmem:[%s427_s2 + $0x30] sm:$0xff]  ;;  %v113_v14 = vld [vmem:[%s427_s2 + $0x38] sm:$0xff]  ;;  %s330_s0 = smov [#allocation3]  }
   0x9   :  { %v285_v15 = vpack.c.bf16 %v113_v14, %v112_v13  ;;  %v114_v16 = vld [vmem:[%s427_s2 + $0x40] sm:$0xff]  ;;  %v115_v17 = vld [vmem:[%s427_s2 + $0x48] sm:$0xff]  ;;  %v116_v19 = vld [vmem:[%s427_s2 + $0x50] sm:$0xff]  ;;  %s206_s1 = sshll.u32 %s330_s0, 4  ;;  %s207_s1 = int_to_ptr.vmem [resolvable:$true] %s206_s1 }
   0xa   :  { %280 = vmatpush3.bf16.msra.mxu1 %v279_v9  ;;  %v288_v18 = vpack.c.bf16 %v115_v17, %v114_v16  ;;  %v117_v20 = vld [vmem:[%s427_s2 + $0x58] sm:$0xff]  ;;  %v118_v22 = vld [vmem:[%s427_s2 + $0x60] sm:$0xff]  ;;  %v119_v23 = vld [vmem:[%s427_s2 + $0x68] sm:$0xff]  ;;  %s303_s25 = scalar_lea.vmem %s207_s1, 128  ;;  %p308_p1 = scmp.lt.s32.totalorder %s207_s1, %s207_s1 }
   0xb   :  { %281 = vmatprep.subr.bf16.mxu1 %v329_v6  ;;  %v291_v21 = vpack.c.bf16 %v117_v20, %v116_v19  ;;  %v294_v24 = vpack.c.bf16 %v119_v23, %v118_v22  ;;  %v120_v25 = vld [vmem:[%s427_s2 + $0x70] sm:$0xff]  ;;  %v121_v26 = vld [vmem:[%s427_s2 + $0x78] sm:$0xff]  ;;  %v215_v30 = vld [vmem:[%s428_s3] ss:$0 sm:$0xff]  ;;  %p304_p0 = scmp.ne.s32.totalorder %s207_s1, %s303_s25  ;;  %p309_p2 = scmp.lt.s32.totalorder %s303_s25, %s303_s25 }
   0xc   :  { %v297_v27 = vpack.c.bf16 %v121_v26, %v120_v25 }
   0xd   :  { %p310_p3 = por %p309_p2, %p308_p1 }
   0xe   :  { %283 = vmatpush3.bf16.msra.mxu1 %v282_v12 }
   0xf   :  { %284 = vmatprep.subr.bf16.mxu1 %v329_v6  ;;  %p311_p4 = pnand %p310_p3, %p304_p0 }
  0x12   :  { %286 = vmatpush3.bf16.msra.mxu1 %v285_v15 }
  0x13   :  { %287 = vmatprep.subr.bf16.mxu1 %v329_v6 }
  0x16   :  { %289 = vmatpush3.bf16.msra.mxu1 %v288_v18 }
  0x17   :  { %290 = vmatprep.subr.bf16.mxu1 %v329_v6 }
  0x1a   :  { %292 = vmatpush3.bf16.msra.mxu1 %v291_v21 }
  0x1b   :  { %293 = vmatprep.subr.bf16.mxu1 %v329_v6 }
  0x1e   :  { %295 = vmatpush3.bf16.msra.mxu1 %v294_v24 }
  0x1f   :  { %296 = vmatprep.subr.bf16.mxu1 %v329_v6 }
  0x22   :  { %298 = vmatpush3.bf16.msra.mxu1 %v297_v27 }
  0xd6   :  { %v96_v28 = vpop.f32.mrb[0].mxu0 }
  0xd7   :  { %v239_v29 = vpop.f32.mrb[1].mxu0  ;;  %273 = vmatmul.mubr.f32.vlgmr.msra.gmra.mrb[0].mxu1 %v96_v28 }
 0x1aa   :  { %v195_v31 = vpop.f32.mrb[0].mxu1 }
 0x1ab   :  { %v196_v32 = vadd.f32 %v215_v30, %v195_v31  ;;  %v274_v33 = vpop.f32.mrb[1].mxu1 }
 0x1ad   :  { %199 = vst [vmem:[#allocation3] sm:$0xff] %v196_v32 }
 0x1ae   :  { %314 = shalt.err (!%p311_p4)
}
 0x1af   :  { %s315_s27 = scalar_lea.hbm %s429_s4, 128 }
 0x1b0   :  { %p316_p5 = scmp.ne.s32.totalorder %s429_s4, %s315_s27  ;;  %p319_p6 = scmp.lt.u32.totalorder %s315_s27, %s429_s4 }
 0x1b2   :  { %p321_p7 = pnand %p319_p6, %p316_p5 }
 0x1b4   :  { %324 = shalt.err (!%p321_p7)
}
 0x1b5   :  { %209 = dma.vmem_to_hbm [thread:$0]  %s207_s1, 128, %s429_s4, [#allocation4]  }
 0x1b6   :  { %325 = dma.done.wait [#allocation4], 128  }
 0x1b7   :  { %326 = vsyncadd [#allocation4], 4294967168 }
 0x1b8   :  { %213 = vsyncpa [#allocation4], 1 }

</bundles_post_ra>
